<compile_context>
chip_gen: v5e
topology: v5e:2x2
jax: 0.10.0
libtpu: 0.0.40
codegen_flags: <defaults>
</compile_context>

<pallas_src>
import jax
import jax.numpy as jnp
from jax.experimental import pallas as pl
from jax.experimental.pallas import tpu as pltpu


def _dma_identity_kernel(x_hbm, o_hbm, sem):
    # One whole-array HBM->HBM DMA; no VMEM staging, no in-kernel vld/vst.
    cp = pltpu.make_async_copy(x_hbm, o_hbm, sem)
    cp.start()
    cp.wait()


def _pallas_identity(a):
    """Identity copy of `a` via a single HBM->HBM async DMA (demo/debug only)."""
    if a.size == 0:
        return a
    return pl.pallas_call(
        _dma_identity_kernel,
        out_shape=jax.ShapeDtypeStruct(a.shape, a.dtype),
        in_specs=[pl.BlockSpec(memory_space=pl.ANY)],
        out_specs=pl.BlockSpec(memory_space=pl.ANY),
        scratch_shapes=[pltpu.SemaphoreType.DMA(())],
    )(a)


def id_forward(x, *, use_pallas_copy=False):
    """JAX equivalent of ID.forward: x is a list, return x[-1].

    Hot path returns the array directly (optimal: zero HBM traffic).
    Set use_pallas_copy=True only to exercise/demonstrate the Pallas DMA kernel.
    """
    assert isinstance(x, list)
    last = x[-1]
    if use_pallas_copy:
        return _pallas_identity(last)
    return last


class ID:
    """Mirror of the PyTorch module; latent_dim is unused in forward."""

    def __init__(self, latent_dim):
        self.latent_dim = latent_dim

    def __call__(self, x, *, use_pallas_copy=False):
        return id_forward(x, use_pallas_copy=use_pallas_copy)


if __name__ == "__main__":
    key = jax.random.PRNGKey(0)
    k1, k2, k3 = jax.random.split(key, 3)
    feats = [
        jax.random.normal(k1, (2, 4, 16, 16), dtype=jnp.float32),
        jax.random.normal(k2, (2, 8, 8, 8), dtype=jnp.float32),
        jax.random.normal(k3, (2, 4, 16, 16), dtype=jnp.float32),
    ]

    model = ID(latent_dim=32)

    # Hot path (production): pure identity, no kernel launched.
    out = jax.block_until_ready(model(feats))
    assert out.shape == feats[-1].shape and out.dtype == feats[-1].dtype
    assert bool(jnp.array_equal(out, feats[-1]))

    # Demo path: run the Pallas HBM->HBM DMA identity kernel once.
    out_k = jax.block_until_ready(model(feats, use_pallas_copy=True))
    assert out_k.shape == feats[-1].shape and out_k.dtype == feats[-1].dtype
    assert bool(jnp.array_equal(out_k, feats[-1]))

    # Awkward shape (not a multiple of 128 elements): the raw-DMA path has no
    # (8,128) tiling constraints and bounded VMEM use regardless of shape.
    odd = jax.random.normal(jax.random.PRNGKey(1), (3, 5, 7), dtype=jnp.float32)
    out_odd = jax.block_until_ready(id_forward([feats[0], odd], use_pallas_copy=True))
    assert out_odd.shape == odd.shape and out_odd.dtype == odd.dtype
    assert bool(jnp.array_equal(out_odd, odd))

    print("KERNEL_OK")
</pallas_src>

<mosaic_0001>
module attributes {stable_mosaic.version = 11 : i64} {
  func.func @_dma_identity_kernel(%arg0: memref<2x4x16x16xf32, #tpu.memory_space<any>>, %arg1: memref<2x4x16x16xf32, #tpu.memory_space<any>>, %arg2: memref<!tpu.dma_semaphore, #tpu.memory_space<semaphore_mem>>) attributes {dimension_semantics = [], scalar_prefetch = 0 : i64, scratch_operands = 1 : i64, tpu.core_type = #tpu.core_type<tc>} {
    tpu.enqueue_dma source(%arg0 : memref<2x4x16x16xf32, #tpu.memory_space<any>>) target(%arg1 : memref<2x4x16x16xf32, #tpu.memory_space<any>>) target_semaphore(%arg2 : memref<!tpu.dma_semaphore, #tpu.memory_space<semaphore_mem>>)
    tpu.wait_dma2 semaphore(%arg2 : memref<!tpu.dma_semaphore, #tpu.memory_space<semaphore_mem>>) src(%arg0 : memref<2x4x16x16xf32, #tpu.memory_space<any>>) dst(%arg1 : memref<2x4x16x16xf32, #tpu.memory_space<any>>)
    return
  }
}

</mosaic_0001>

<bundles_post_ra>
// kernel: tpu_custom_call.1
= control target key start
LH: loop header
LB: loop body
LE: loop exit
PB: predicated region body
PF: predicated region fallthrough
CT: control target
= control target key end

     0   :  { %s34_s12 = smov [#allocation2]   ;;  %s35_s13 = smov [#allocation3]   ;;  %s53_s0 = inlined_call_operand.hbm [shape: f32[2,4,16,16], index: 0, kind: input, shape index: {}]   ;;  %s54_s1 = inlined_call_operand.hbm [shape: f32[2,4,16,16], index: 1, kind: output, shape index: {}]  }
   0x1   :  { %s10_s8 = sshll.u32 %s53_s0, 4  ;;  %s12_s11 = sshll.u32 %s54_s1, 4  ;;  %s11_s8 = int_to_ptr.hbm [resolvable:$true] %s10_s8  ;;  %s13_s11 = int_to_ptr.hbm [resolvable:$true] %s12_s11 }
   0x2   :  { %s36_s14 = smov 0  }
   0x3   :  { %16 = dma.general %s11_s8, 2048, %s13_s11, %s34_s12, %s35_s13, [#allocation4], %s36_s14, 0  }
   0x4   :  { %32 = dma.done.wait [#allocation2], 2048 }
   0x5   :  { %33 = vsyncadd [#allocation2], 4294965248 }
   0x6   :  { %22 = vsyncmov [#allocation2] }
   0x9   :  { %s23_s15 = vpop.sfrf %22 }
   0xa   :  { %p28_p0 = scmp.ne.s32.totalorder %s23_s15, 0 }
   0xc   :  { %27 = shalt.err (%p28_p0)  }

</bundles_post_ra>
